<compile_context>
chip_gen: v7x
topology: tpu7x:2x2x1
jax: 0.10.0
libtpu: 0.0.40
codegen_flags: <defaults>
</compile_context>

<pallas_src>
import functools

import jax
import jax.numpy as jnp
from jax.experimental import pallas as pl
from jax.experimental.pallas import tpu as pltpu


def _bagnet_head_kernel(f_ref, w_ref, b_ref, act_ref, out_ref, acc_ref, *,
                        inv_hw):
    # f_ref:   (1, C, T)  channels-major feature tile of one batch element
    # w_ref:   (K, C)     1x1-conv weight as a matmul operand
    # b_ref:   (K, 1)     classifier bias (column vector, lane-broadcast)
    # act_ref: (1, K, T)  per-pixel logits tile (== Conv2d 1x1 output)
    # out_ref: (1, K, 1)  globally average-pooled logits (written on last tile)
    # acc_ref: (K, 1)     f32 scratch: running spatial sum of the logits
    t = pl.program_id(1)

    @pl.when(t == 0)
    def _init():
        acc_ref[...] = jnp.zeros_like(acc_ref)

    # 1x1 conv == per-pixel matmul on the MXU, f32 accumulation.
    act = jnp.dot(w_ref[...], f_ref[0],
                  preferred_element_type=jnp.float32) + b_ref[...]   # [K, T]
    act_ref[0] = act.astype(act_ref.dtype)

    # Partial global-average-pool sum for this spatial tile (XLU reduce —
    # effectively free next to the MXU / store path).
    acc_ref[...] += jnp.sum(act, axis=1, keepdims=True)              # [K, 1]

    @pl.when(t == pl.num_programs(1) - 1)
    def _finalize():
        # AvgPool2d(kernel_size=(H, W)) == mean over all HW pixels.
        out_ref[0] = (acc_ref[...] * inv_hw).astype(out_ref.dtype)


def _pick_tile_hw(hw, c, k, feat_bytes, act_bytes,
                  vmem_budget_bytes=24 * 1024 * 1024):
    """Largest spatial tile that (a) satisfies the TPU lane constraint
    (multiple of 128, or the full HW extent) and (b) keeps the double-buffered
    feature + activation tiles inside a conservative VMEM budget, so the kernel
    also fits v7x's 64 MiB VMEM and v5e's smaller scoped default."""
    if hw <= 128:
        return hw
    candidates = [t for t in range(128, hw + 1, 128) if hw % t == 0]
    if not candidates:
        # No multiple-of-128 divisor: the block must span the full extent.
        return hw
    for t in sorted(candidates, reverse=True):
        tile_bytes = 2 * t * c * feat_bytes + 2 * t * k * act_bytes
        if tile_bytes <= vmem_budget_bytes:
            return t
    return candidates[0]


def sparse_bagnet_head(features_nchw, clf_weight, clf_bias, *,
                       tile_hw=None,
                       compute_dtype=jnp.bfloat16,
                       return_att_weight=True):
    """SparseBagnet forward (post-backbone).

    features_nchw: [B, C, H, W] backbone feature map (NCHW, like PyTorch).
    clf_weight:    [K, C, 1, 1] Conv2d(num_channels, num_classes, 1x1) weight.
    clf_bias:      [K]          Conv2d bias.
    compute_dtype: dtype the feature map / weight are fed to the MXU in
                   (bf16 halves the dominant HBM read; accumulation is f32).

    Returns (out [B, K], activation [B, K, H, W], att_weight zeros [B, C, H, W])
    in float32, matching the PyTorch module's outputs.
    """
    B, C, H, W = features_nchw.shape
    K = clf_weight.shape[0]
    HW = H * W

    # NCHW -> [B, C, HW]: a pure reshape (no transpose / no extra HBM pass).
    f = features_nchw.reshape(B, C, HW).astype(compute_dtype)
    w2d = clf_weight.reshape(K, C).astype(compute_dtype)   # [K, C]
    b2d = clf_bias.reshape(K, 1).astype(jnp.float32)       # [K, 1]

    feat_bytes = jnp.dtype(compute_dtype).itemsize
    if tile_hw is None:
        tile_hw = _pick_tile_hw(HW, C, K, feat_bytes, 4)
    assert HW % tile_hw == 0, (HW, tile_hw)
    n_hw_tiles = HW // tile_hw

    kernel = functools.partial(_bagnet_head_kernel, inv_hw=1.0 / HW)

    act_flat, out3 = pl.pallas_call(
        kernel,
        out_shape=(
            jax.ShapeDtypeStruct((B, K, HW), jnp.float32),
            jax.ShapeDtypeStruct((B, K, 1), jnp.float32),
        ),
        grid_spec=pltpu.PrefetchScalarGridSpec(
            num_scalar_prefetch=0,
            grid=(B, n_hw_tiles),
            in_specs=[
                pl.BlockSpec((1, C, tile_hw), lambda b, t: (b, 0, t)),
                pl.BlockSpec((K, C), lambda b, t: (0, 0)),
                pl.BlockSpec((K, 1), lambda b, t: (0, 0)),
            ],
            out_specs=[
                # Lane-dense activation store: lane dim = spatial tile.
                pl.BlockSpec((1, K, tile_hw), lambda b, t: (b, 0, t)),
                # Same block across the spatial axis -> stays resident in VMEM
                # until the batch index changes (accumulate/finalize pattern).
                pl.BlockSpec((1, K, 1), lambda b, t: (b, 0, 0)),
            ],
            scratch_shapes=[pltpu.VMEM((K, 1), jnp.float32)],
        ),
        compiler_params=pltpu.CompilerParams(
            # Batch axis shards across TensorCores (v7x megacore); the spatial
            # axis carries the pooled-sum accumulator -> must stay sequential.
            dimension_semantics=("parallel", "arbitrary"),
            # Explicit scoped-VMEM limit: under v7x's 64 MiB physical, above
            # v5e's 16 MiB scoped default.
            vmem_limit_bytes=48 * 1024 * 1024,
        ),
    )(f, w2d, b2d)

    # Channels-major [B, K, HW] -> NCHW [B, K, H, W] is a free reshape.
    activation = act_flat.reshape(B, K, H, W)
    out = out3.reshape(B, K)

    if not return_att_weight:
        return out, activation, None
    # The PyTorch module returns torch.zeros((bs, c, h, w)); materializing it
    # costs a feature-map-sized HBM write — pass return_att_weight=False if no
    # consumer needs it as a dense array.
    att_weight = jnp.zeros((B, C, H, W), jnp.float32)
    return out, activation, att_weight


if __name__ == "__main__":
    # Small, deterministic shapes: backbone features [B=2, C=32, H=16, W=16],
    # num_classes K=10 (classifier Conv2d(C, K, kernel_size=(1, 1))).
    B, C, H, W, K = 2, 32, 16, 16, 10
    key = jax.random.PRNGKey(0)
    k_feat, k_w, k_b = jax.random.split(key, 3)

    features = jax.random.normal(k_feat, (B, C, H, W), dtype=jnp.float32)
    clf_weight = (jax.random.normal(k_w, (K, C, 1, 1), dtype=jnp.float32)
                  * (1.0 / jnp.sqrt(C)))
    clf_bias = jax.random.normal(k_b, (K,), dtype=jnp.float32) * 0.01

    # Pure-JAX reference of the head semantics.
    ref_act = (jnp.einsum('bchw,kc->bkhw', features, clf_weight[:, :, 0, 0])
               + clf_bias[None, :, None, None])
    ref_out = jnp.mean(ref_act, axis=(2, 3))

    # 1) Exactness check: f32 compute path, auto-picked spatial tile.
    run_f32 = jax.jit(functools.partial(sparse_bagnet_head,
                                        compute_dtype=jnp.float32))
    out32, act32, att32 = run_f32(features, clf_weight, clf_bias)
    jax.block_until_ready((out32, act32, att32))
    assert out32.shape == (B, K)
    assert act32.shape == (B, K, H, W)
    assert att32.shape == (B, C, H, W)
    assert jnp.allclose(act32, ref_act, atol=2e-4, rtol=2e-4)
    assert jnp.allclose(out32, ref_out, atol=2e-4, rtol=2e-4)
    assert jnp.all(att32 == 0)

    # 2) Performance-default path: bf16 MXU inputs, multi-tile spatial
    #    accumulation (tile_hw=128 -> 2 spatial tiles per batch element).
    run_bf16 = jax.jit(functools.partial(sparse_bagnet_head,
                                         tile_hw=128,
                                         compute_dtype=jnp.bfloat16))
    out, activation, att_weight = run_bf16(features, clf_weight, clf_bias)
    jax.block_until_ready((out, activation, att_weight))
    assert out.shape == (B, K)
    assert activation.shape == (B, K, H, W)
    assert att_weight.shape == (B, C, H, W)
    assert jnp.allclose(activation, ref_act, atol=5e-2, rtol=5e-2)
    assert jnp.allclose(out, ref_out, atol=5e-2, rtol=5e-2)
    assert jnp.all(att_weight == 0)

    print("KERNEL_OK")
</pallas_src>

<mosaic_0001>
module attributes {stable_mosaic.version = 11 : i64} {
  func.func @_bagnet_head_kernel(%arg0: i32, %arg1: i32, %arg2: memref<1x32x256xf32, #tpu.memory_space<vmem>>, %arg3: memref<10x32xf32, #tpu.memory_space<vmem>>, %arg4: memref<10x1xf32, #tpu.memory_space<vmem>>, %arg5: memref<1x10x256xf32, #tpu.memory_space<vmem>>, %arg6: memref<1x10x1xf32, #tpu.memory_space<vmem>>, %arg7: memref<10x1xf32, #tpu.memory_space<vmem>>) attributes {dimension_semantics = [#tpu.dimension_semantics<parallel>, #tpu.dimension_semantics<arbitrary>], iteration_bounds = array<i64: 2, 1>, scalar_prefetch = 0 : i64, scratch_operands = 1 : i64, tpu.core_type = #tpu.core_type<tc>, window_params = [{transform_indices = @transform_0, window_bounds = array<i64: 1, 32, 256>}, {pipeline_mode = #tpu.pipeline_mode<synchronous>, transform_indices = @transform_1, window_bounds = array<i64: 10, 32>}, {pipeline_mode = #tpu.pipeline_mode<synchronous>, transform_indices = @transform_2, window_bounds = array<i64: 10, 1>}, {transform_indices = @transform_3, window_bounds = array<i64: 1, 10, 256>}, {transform_indices = @transform_4, window_bounds = array<i64: 1, 10, 1>}]} {
    %c0_i32 = arith.constant 0 : i32
    %0 = arith.cmpi eq, %arg1, %c0_i32 : i32
    %1 = arith.extui %0 : i1 to i32
    %c0_i32_0 = arith.constant 0 : i32
    %2 = arith.cmpi ne, %1, %c0_i32_0 : i32
    scf.if %2 {
      %cst_17 = arith.constant 0.000000e+00 : f32
      %21 = vector.broadcast %cst_17 : f32 to vector<10x1xf32>
      %c0_18 = arith.constant 0 : index
      %c0_19 = arith.constant 0 : index
      %22 = vector.load %arg7[%c0_18, %c0_19] : memref<10x1xf32, #tpu.memory_space<vmem>>, vector<10x1xf32>
      tpu.vector_store %arg7[%c0_18, %c0_19], %21 {strides = array<i32>} : memref<10x1xf32, #tpu.memory_space<vmem>>, vector<10x1xf32>,
    } else {
    }
    %c0 = arith.constant 0 : index
    %c0_1 = arith.constant 0 : index
    %3 = vector.load %arg3[%c0, %c0_1] : memref<10x32xf32, #tpu.memory_space<vmem>>, vector<10x32xf32>
    %c0_2 = arith.constant 0 : index
    %c0_3 = arith.constant 0 : index
    %c0_4 = arith.constant 0 : index
    %4 = vector.load %arg2[%c0_2, %c0_3, %c0_4] : memref<1x32x256xf32, #tpu.memory_space<vmem>>, vector<1x32x256xf32>
    %5 = vector.shape_cast %4 : vector<1x32x256xf32> to vector<32x256xf32>
    %cst = arith.constant dense<0.000000e+00> : vector<10x256xf32>
    %6 = tpu.matmul %3, %5, %cst {dimension_numbers = #tpu.dot_dimension_numbers<[1], [0], [0], [1], [0, 0, 1, 1], [], []>} : vector<10x32xf32>, vector<32x256xf32>, vector<10x256xf32> -> vector<10x256xf32>
    %c0_5 = arith.constant 0 : index
    %c0_6 = arith.constant 0 : index
    %7 = vector.load %arg4[%c0_5, %c0_6] : memref<10x1xf32, #tpu.memory_space<vmem>>, vector<10x1xf32>
    %8 = vector.broadcast %7 : vector<10x1xf32> to vector<10x256xf32>
    %9 = arith.addf %6, %8 : vector<10x256xf32>
    %c0_7 = arith.constant 0 : index
    %c0_8 = arith.constant 0 : index
    %c0_9 = arith.constant 0 : index
    %10 = vector.load %arg5[%c0_7, %c0_8, %c0_9] : memref<1x10x256xf32, #tpu.memory_space<vmem>>, vector<1x10x256xf32>
    %11 = vector.shape_cast %10 : vector<1x10x256xf32> to vector<10x256xf32>
    %12 = vector.shape_cast %9 : vector<10x256xf32> to vector<1x10x256xf32>
    tpu.vector_store %arg5[%c0_7, %c0_8, %c0_9], %12 {strides = array<i32>} : memref<1x10x256xf32, #tpu.memory_space<vmem>>, vector<1x10x256xf32>,
    %c0_10 = arith.constant 0 : index
    %c0_11 = arith.constant 0 : index
    %13 = vector.load %arg7[%c0_10, %c0_11] : memref<10x1xf32, #tpu.memory_space<vmem>>, vector<10x1xf32>
    %cst_12 = arith.constant dense<0.000000e+00> : vector<10xf32>
    %14 = vector.multi_reduction <add>, %9, %cst_12 [1] : vector<10x256xf32> to vector<10xf32>
    %15 = vector.shape_cast %14 : vector<10xf32> to vector<10x1xf32>
    %16 = arith.addf %13, %15 : vector<10x1xf32>
    %c0_13 = arith.constant 0 : index
    %c0_14 = arith.constant 0 : index
    %17 = vector.load %arg7[%c0_13, %c0_14] : memref<10x1xf32, #tpu.memory_space<vmem>>, vector<10x1xf32>
    tpu.vector_store %arg7[%c0_13, %c0_14], %16 {strides = array<i32>} : memref<10x1xf32, #tpu.memory_space<vmem>>, vector<10x1xf32>,
    %c0_i32_15 = arith.constant 0 : i32
    %18 = arith.cmpi eq, %arg1, %c0_i32_15 : i32
    %19 = arith.extui %18 : i1 to i32
    %c0_i32_16 = arith.constant 0 : i32
    %20 = arith.cmpi ne, %19, %c0_i32_16 : i32
    scf.if %20 {
      %c0_17 = arith.constant 0 : index
      %c0_18 = arith.constant 0 : index
      %21 = vector.load %arg7[%c0_17, %c0_18] : memref<10x1xf32, #tpu.memory_space<vmem>>, vector<10x1xf32>
      %cst_19 = arith.constant 3.906250e-03 : f32
      %22 = vector.broadcast %cst_19 : f32 to vector<10x1xf32>
      %23 = arith.mulf %21, %22 : vector<10x1xf32>
      %c0_20 = arith.constant 0 : index
      %c0_21 = arith.constant 0 : index
      %c0_22 = arith.constant 0 : index
      %24 = vector.load %arg6[%c0_20, %c0_21, %c0_22] : memref<1x10x1xf32, #tpu.memory_space<vmem>>, vector<1x10x1xf32>
      %25 = vector.shape_cast %24 : vector<1x10x1xf32> to vector<10x1xf32>
      %26 = vector.shape_cast %23 : vector<10x1xf32> to vector<1x10x1xf32>
      tpu.vector_store %arg6[%c0_20, %c0_21, %c0_22], %26 {strides = array<i32>} : memref<1x10x1xf32, #tpu.memory_space<vmem>>, vector<1x10x1xf32>,
    } else {
    }
    return
  }
  func.func @transform_0(%arg0: i32, %arg1: i32) -> (i32, i32, i32) {
    %c0_i32 = arith.constant 0 : i32
    %c0_i32_0 = arith.constant 0 : i32
    return %arg0, %c0_i32, %arg1 : i32, i32, i32
  }
  func.func @transform_1(%arg0: i32, %arg1: i32) -> (i32, i32) {
    %c0_i32 = arith.constant 0 : i32
    %c0_i32_0 = arith.constant 0 : i32
    %c0_i32_1 = arith.constant 0 : i32
    return %c0_i32, %c0_i32_0 : i32, i32
  }
  func.func @transform_2(%arg0: i32, %arg1: i32) -> (i32, i32) {
    %c0_i32 = arith.constant 0 : i32
    %c0_i32_0 = arith.constant 0 : i32
    %c0_i32_1 = arith.constant 0 : i32
    return %c0_i32, %c0_i32_0 : i32, i32
  }
  func.func @transform_3(%arg0: i32, %arg1: i32) -> (i32, i32, i32) {
    %c0_i32 = arith.constant 0 : i32
    %c0_i32_0 = arith.constant 0 : i32
    return %arg0, %c0_i32, %arg1 : i32, i32, i32
  }
  func.func @transform_4(%arg0: i32, %arg1: i32) -> (i32, i32, i32) {
    %c0_i32 = arith.constant 0 : i32
    %c0_i32_0 = arith.constant 0 : i32
    %c0_i32_1 = arith.constant 0 : i32
    return %arg0, %c0_i32, %c0_i32_0 : i32, i32, i32
  }
}

</mosaic_0001>

<bundles_post_ra>
// kernel: sparse_bagnet_head.1
= control target key start
LH: loop header
LB: loop body
LE: loop exit
PB: predicated region body
PF: predicated region fallthrough
CT: control target
= control target key end

     0   :  { %s622_s15 = smov 0   ;;  %s624_s16 = smov 0   ;;  %s681_s0 = inlined_call_operand.vmem [shape: f32[2,32,256], index: 0, kind: input, shape index: {}]   ;;  %s682_s1 = inlined_call_operand.vmem [shape: f32[10,32], index: 1, kind: input, shape index: {}]   ;;  %s683_s2 = inlined_call_operand.vmem [shape: f32[10,1], index: 2, kind: input, shape index: {}]   ;;  %s684_s3 = inlined_call_operand.vmem [shape: f32[2,10,256], index: 3, kind: output, shape index: {0}]   ;;  %s685_s4 = inlined_call_operand.vmem [shape: f32[2,10,1], index: 4, kind: output, shape index: {1}]  }
   0x1   :  { %s626_s17 = smov 0  }
   0x2 LB: > { %s27_s18 = sadd.s32 1, %s589_s16  ;;  %p518_p0 = scmp.ge.s32.totalorder %s593_s17, 1  ;;  %s593_s17 = sphi %s626_s17, %s15_s17   ;;  %s589_s16 = sphi %s624_s16, %s687_s16   ;;  %s585_s15 = sphi %s622_s15, %s686_s15  }
   0x3   : > { %p29_p1 = scmp.ge.s32.totalorder %s27_s18, 2  ;;  %p186_p2 = scmp.lt.s32.totalorder %s593_s17, 3 }
   0x5   : > { %s689_s18 = smov (%p29_p1, %s27_s18), 0  ;;  %p187_p3 = pnand %p518_p0, %p186_p2 }
   0x6   : > { %p226_p4 = scmp.lt.s32.totalorder (!%p187_p3), %s585_s15, 1  ;;  %vm254_vm0 = vcmask (!%p187_p3), 7168   ;;  %vm256_vm1 = vcmask (!%p187_p3), 1024   ;;  %v595_v0 = vmov (!%p187_p3), 0.0   ;;  %v269_v1 = vld [vmem:[%s683_s2 + $0x8] sm:$0x3] (!%p187_p3) }
   0x7   : > { %190 = sbr.rel (%p187_p3) target bundleno = 404 (0x194), region = 32  ;;  %255 = vst.msk [vmem:[#allocation2] sm:$0xff] (!%p187_p3), %vm254_vm0, %v595_v0  ;;  %351 = vmatprep.mubr.f32.mxu0 (!%p187_p3), %v595_v0  ;;  %357 = vmatprep.mubr.f32.mxu1 (!%p187_p3), %v595_v0  ;;  %v596_v2 = vmov (!%p187_p3), 0   ;;  %v268_v3 = vld [vmem:[%s683_s2] sm:$0xff] (!%p187_p3)  ;;  %vm280_vm2 = vcmask (!%p187_p3), 261120   ;;  %vm373_vm3 = vcmask (!%p187_p3), 1041408  }
   0x8   : > { %257 = vst.msk [vmem:[#allocation2 + $0x8] sm:$0x3] (!%p187_p3), %vm256_vm1, %v595_v0  ;;  %570 = vset.pattern.permute.xlu0 (!%p187_p3), %v596_v2  ;;  %v258_v16 = vld [vmem:[%s682_s1] sm:$0xff] (!%p187_p3)  ;;  %v259_v17 = vld [vmem:[%s682_s1 + $0x8] sm:$0x3] (!%p187_p3) }
   0x9   : > { %277 = vperm.xlu0 (!%p187_p3), %570, %v269_v1  }
   0xd   : > { %272 = vperm.xlu0 (!%p187_p3), %570, %v268_v3  }
   0xe   : > { %s691_s15 = smov (!%p226_p4, %s585_s15), 1  ;;  %v368_v32 = vld [vmem:[#allocation2] sm:$0xff] }
   0xf   : > { %s529_s21 = sshll.u32 %s691_s15, 6  ;;  %s530_s5 = sshll.u32 %s691_s15, 5  ;;  %v369_v35 = vld [vmem:[#allocation2 + $0x8] sm:$0x3] }
  0x10   : > { %s233_s26 = scalar_lea.vmem %s681_s0, %s529_s21  ;;  %s243_s8 = scalar_lea.vmem %s684_s3, %s530_s5 }
  0x11   : > { %v261_v4 = vld [vmem:[%s233_s26 + $0x8] sm:$0xff]  ;;  %v263_v5 = vld [vmem:[%s233_s26 + $0x18] sm:$0xff]  ;;  %v260_v6 = vld [vmem:[%s233_s26] sm:$0xff]  ;;  %s531_s9 = sshll.u32 %s691_s15, 4 }
  0x12   : > { %v532_v7 = vpack.c.bf16 %v263_v5, %v261_v4  ;;  %v262_v8 = vld [vmem:[%s233_s26 + $0x10] sm:$0xff]  ;;  %v265_v9 = vld [vmem:[%s233_s26 + $0x28] sm:$0xff]  ;;  %v267_v10 = vld [vmem:[%s233_s26 + $0x38] sm:$0xff]  ;;  %s249_s12 = scalar_lea.vmem %s685_s4, %s531_s9 }
  0x13   : > { %v534_v11 = vpack.c.bf16 %v262_v8, %v260_v6  ;;  %v536_v12 = vpack.c.bf16 %v267_v10, %v265_v9  ;;  %v264_v13 = vld [vmem:[%s233_s26 + $0x20] sm:$0xff]  ;;  %v266_v14 = vld [vmem:[%s233_s26 + $0x30] sm:$0xff] }
  0x14   : > { %533 = vmatprep.subr.bf16.mxu0 %v532_v7  ;;  %540 = vmatprep.subr.bf16.mxu1 %v532_v7  ;;  %v538_v15 = vpack.c.bf16 %v266_v14, %v264_v13 }
  0x15   : > { %535 = vmatpush1.bf16.msra.mxu0 %v534_v11  ;;  %542 = vmatpush1.bf16.msra.mxu1 %v534_v11 }
  0x16   : > { %537 = vmatprep.subr.bf16.mxu0 %v536_v12  ;;  %541 = vmatprep.subr.bf16.mxu1 %v536_v12 }
  0x19   : > { %539 = vmatpush1.bf16.msra.mxu0 %v538_v15  ;;  %543 = vmatpush1.bf16.msra.mxu1 %v538_v15 }
  0x1c   : > { %525 = vmatmul.mubr.msk.f32.vlgmr.msra.gmra.mrb[0].mxu0 %vm280_vm2, %v258_v16  ;;  %526 = vmatmul.mubr.msk.f32.vlgmr.msra.gmra.mrb[0].mxu1 %vm280_vm2, %v259_v17 }
  0x88   : > { %v278_v18 = vpop.permute.xlu0 %277 }
  0x8c   : > { %v273_v19 = vpop.permute.xlu0 %272 }
  0xef   : > { %v353_v20 = vpop.f32.mrb[0].mxu0  ;;  %v359_v21 = vpop.f32.mrb[0].mxu1 }
  0xf0   : > { %v354_v22 = vadd.f32 %v353_v20, %v273_v19  ;;  %v360_v23 = vadd.f32 %v359_v21, %v278_v18  ;;  %v355_v24 = vpop.f32.mrb[1].mxu0  ;;  %v361_v25 = vpop.f32.mrb[1].mxu1 }
  0xf1   : > { %v356_v26 = vadd.f32 %v355_v24, %v273_v19  ;;  %v362_v27 = vadd.f32 %v361_v25, %v278_v18 }
  0xf2   : > { %364 = vst [vmem:[%s243_s8] sm:$0xff] %v354_v22  ;;  %366 = vst [vmem:[%s243_s8 + $0x10] sm:$0x3] %v360_v23  ;;  %v374_v28 = vsel %vm373_vm3, %v360_v23, 0.0 }
  0xf3   : > { %365 = vst [vmem:[%s243_s8 + $0x8] sm:$0xff] %v356_v26  ;;  %367 = vst [vmem:[%s243_s8 + $0x18] sm:$0x3] %v362_v27  ;;  %v370_v29 = vadd.f32 %v356_v26, %v354_v22  ;;  %v375_v30 = vsel %vm373_vm3, %v362_v27, 0.0 }
  0xf4   : > { %v376_v31 = vadd.f32 %v375_v30, %v374_v28 }
  0xf5   : > { %371 = vadd.xlane.f32.xlu1 %v370_v29 }
  0xf9   : > { %377 = vadd.xlane.f32.xlu1 %v376_v31 }
 0x182   : > { %v372_v33 = vpop.xlane.xlu1 %371 }
 0x183   : > { %v379_v34 = vadd.f32 %v372_v33, %v368_v32 }
 0x185   : > { %382 = vst.msk [vmem:[#allocation2] sm:$0xff] %vm254_vm0, %v379_v34 }
 0x186   : > { %v378_v36 = vpop.xlane.xlu1 %377 }
 0x187   : > { %v380_v37 = vadd.f32 %v378_v36, %v369_v35 }
 0x189   : > { %384 = vst.msk [vmem:[#allocation2 + $0x8] sm:$0x3] %vm256_vm1, %v380_v37 }
 0x18c   : > { %v388_v38 = vld [vmem:[#allocation2] sm:$0xff] }
 0x18d   : > { %v390_v39 = vmul.f32 0.00390625, %v388_v38 }
 0x18f   : > { %392 = vst.msk [vmem:[%s249_s12] sm:$0xff] %vm254_vm0, %v390_v39 }
 0x190   : > { %v389_v40 = vld [vmem:[#allocation2 + $0x8] sm:$0x3] }
 0x191   : > { %v391_v41 = vmul.f32 0.00390625, %v389_v40 }
 0x193   : > { %393 = vst.msk [vmem:[%s249_s12 + $0x8] sm:$0x3] %vm256_vm1, %v391_v41 }
 0x194 PF: > { %s15_s17 = sadd.s32 1, %s593_s17   ;;  %s686_s15 = smov %s589_s16 }
 0x195   : > { %p12_p5 = scmp.ge.s32.totalorder %s15_s17, 4   ;;  %s687_s16 = smov %s689_s18 }
 0x197   :  { %14 = sbr.rel (!%p12_p5) target bundleno = 2 (0x2), region = 82 }

</bundles_post_ra>
